<compile_context>
chip_gen: v7x
topology: tpu7x:2x2x1
jax: 0.10.0
libtpu: 0.0.40
codegen_flags: <defaults>
</compile_context>

<pallas_src>
import numpy as np
import jax
import jax.numpy as jnp
from jax import lax
from jax.experimental import pallas as pl
from jax.experimental.pallas import tpu as pltpu


# ---------------------------------------------------------------------------
# Pallas call: fused twin 3-layer MLP, single grid step, packed weights.
# ---------------------------------------------------------------------------
def _twin_critic_pallas(z_arr, x, packed):
    B, input_dim = x.shape
    num_options, rows, two_f = packed.shape
    tail = input_dim + two_f          # start of the 8-row bias/head tail

    def kernel(z_ref, x_ref, w_ref, o_ref):
        del z_ref  # only used by the weight index_map (option selection)
        # layer 1: x @ W1_both + b1, ReLU   (both critics side by side in lanes)
        w1 = w_ref[0:input_dim, :]                     # (input_dim, 2F)
        b1 = w_ref[tail:tail + 1, :]                   # (1, 2F)
        h1 = jnp.maximum(
            jnp.dot(x_ref[...], w1, preferred_element_type=jnp.float32) + b1, 0.0)
        # layer 2: block-diagonal W2_both keeps the two critics independent
        w2 = w_ref[input_dim:tail, :]                  # (2F, 2F)
        b2 = w_ref[tail + 1:tail + 2, :]               # (1, 2F)
        h2 = jnp.maximum(
            jnp.dot(h1, w2, preferred_element_type=jnp.float32) + b2, 0.0)
        # layer 3: folded two-critic head -> lane-dense (B, 2) output
        w3t = w_ref[tail + 2:tail + 4, :]              # (2, 2F), block structured
        b3 = w_ref[tail + 4:tail + 5, 0:2]             # (1, 2)
        out = lax.dot_general(h2, w3t, (((1,), (1,)), ((), ())),
                              preferred_element_type=jnp.float32) + b3
        o_ref[...] = out.astype(o_ref.dtype)

    grid_spec = pltpu.PrefetchScalarGridSpec(
        num_scalar_prefetch=1,                     # z
        grid=(1,),                                 # single fused step
        in_specs=[
            pl.BlockSpec((B, input_dim), lambda i, z: (0, 0)),       # x
            pl.BlockSpec((None, rows, two_f), lambda i, z: (z[0], 0, 0)),  # packed W
        ],
        out_specs=pl.BlockSpec((B, 2), lambda i, z: (0, 0)),
    )
    return pl.pallas_call(
        kernel,
        out_shape=jax.ShapeDtypeStruct((B, 2), jnp.float32),
        grid_spec=grid_spec,
        compiler_params=pltpu.CompilerParams(
            dimension_semantics=("arbitrary",)),
    )(z_arr, x, packed)


# ---------------------------------------------------------------------------
# OP_CriticTwin.forward equivalent (jitted; z may be a traced int)
# ---------------------------------------------------------------------------
@jax.jit
def op_critic_twin_forward(packed, states, actions, z):
    x = jnp.concatenate([states, actions], axis=-1)        # fused once, in XLA
    num_options = packed.shape[0]
    z_arr = jnp.clip(jnp.asarray(z, jnp.int32), 0, num_options - 1).reshape((1,))
    out = _twin_critic_pallas(z_arr, x, packed)             # (B, 2) lane-dense
    return out[:, 0:1], out[:, 1:2], {"z": z}


# ---------------------------------------------------------------------------
# Parameter construction (PyTorch nn.Linear-style init).  Builds both the raw
# per-critic/per-option weights (for the reference) and the packed buffer
# (num_options, input_dim + 2F + 8, 2F) consumed by the kernel.
# ---------------------------------------------------------------------------
def _linear_params(key, fan_in, fan_out):
    kw, kb = jax.random.split(key)
    bound = 1.0 / (fan_in ** 0.5)
    w = jax.random.uniform(kw, (fan_in, fan_out), jnp.float32, -bound, bound)
    b = jax.random.uniform(kb, (fan_out,), jnp.float32, -bound, bound)
    return w, b


def make_op_critic_twin_params(key, state_dim, action_dim, fc_dim, num_options):
    input_dim = state_dim + action_dim
    F = fc_dim
    two_f = 2 * F
    tail = input_dim + two_f
    rows = tail + 8                                  # 8-row sublane-aligned tail
    packed = np.zeros((num_options, rows, two_f), np.float32)
    names = ("w1", "b1", "w2", "b2", "w3", "b3")
    raw = {n: [[None] * num_options for _ in range(2)] for n in names}

    for c in range(2):
        lo, hi = c * F, (c + 1) * F
        for z in range(num_options):
            key, k1, k2, k3 = jax.random.split(key, 4)
            w1, b1 = _linear_params(k1, input_dim, F)
            w2, b2 = _linear_params(k2, F, F)
            w3, b3 = _linear_params(k3, F, 1)
            raw["w1"][c][z], raw["b1"][c][z] = w1, b1
            raw["w2"][c][z], raw["b2"][c][z] = w2, b2
            raw["w3"][c][z], raw["b3"][c][z] = w3, b3
            packed[z, 0:input_dim, lo:hi] = np.asarray(w1)
            packed[z, input_dim + lo:input_dim + hi, lo:hi] = np.asarray(w2)
            packed[z, tail + 0, lo:hi] = np.asarray(b1)
            packed[z, tail + 1, lo:hi] = np.asarray(b2)
            packed[z, tail + 2 + c, lo:hi] = np.asarray(w3)[:, 0]
            packed[z, tail + 4, c] = np.asarray(b3)[0]

    ref = {n: jnp.stack([jnp.stack(raw[n][c]) for c in range(2)]) for n in names}
    return {"packed": jnp.asarray(packed), "ref": ref}


# ---------------------------------------------------------------------------
# Pure-JAX reference for correctness checking
# ---------------------------------------------------------------------------
def _ref_mlp(x, ref, c, z):
    h1 = jnp.maximum(x @ ref["w1"][c, z] + ref["b1"][c, z], 0.0)
    h2 = jnp.maximum(h1 @ ref["w2"][c, z] + ref["b2"][c, z], 0.0)
    return h2 @ ref["w3"][c, z] + ref["b3"][c, z]


if __name__ == "__main__":
    # Small shapes consistent with the module: batch=8, state_dim=24,
    # action_dim=8 -> input_dim=32, fc_dim=32, num_options=3.
    B, state_dim, action_dim = 8, 24, 8
    fc_dim, num_options = 32, 3

    key = jax.random.PRNGKey(0)
    kp, ks, ka = jax.random.split(key, 3)

    params = make_op_critic_twin_params(kp, state_dim, action_dim, fc_dim, num_options)
    states = jax.random.normal(ks, (B, state_dim), jnp.float32)
    actions = jax.random.normal(ka, (B, action_dim), jnp.float32)
    x = jnp.concatenate([states, actions], axis=-1)

    # Check every option index through the SAME compiled kernel (z is dynamic).
    for z in range(num_options):
        v1, v2, info = op_critic_twin_forward(params["packed"], states, actions, z)
        jax.block_until_ready((v1, v2))
        r1 = _ref_mlp(x, params["ref"], 0, z)
        r2 = _ref_mlp(x, params["ref"], 1, z)
        assert v1.shape == (B, 1) and v2.shape == (B, 1)
        assert jnp.allclose(v1, r1, atol=1e-5, rtol=1e-5), (z, float(jnp.max(jnp.abs(v1 - r1))))
        assert jnp.allclose(v2, r2, atol=1e-5, rtol=1e-5), (z, float(jnp.max(jnp.abs(v2 - r2))))
        assert int(info["z"]) == z

    print("KERNEL_OK")
</pallas_src>

<mosaic_0001>
module attributes {stable_mosaic.version = 11 : i64} {
  func.func @kernel(%arg0: i32, %arg1: memref<1xi32, #tpu.memory_space<smem>>, %arg2: memref<8x32xf32, #tpu.memory_space<vmem>>, %arg3: memref<1x104x64xf32, #tpu.memory_space<vmem>>, %arg4: memref<8x2xf32, #tpu.memory_space<vmem>>) attributes {dimension_semantics = [#tpu.dimension_semantics<arbitrary>], iteration_bounds = array<i64: 1>, scalar_prefetch = 1 : i64, scratch_operands = 0 : i64, tpu.core_type = #tpu.core_type<tc>, window_params = [{pipeline_mode = #tpu.pipeline_mode<synchronous>, transform_indices = @transform_0, window_bounds = array<i64: 8, 32>}, {transform_indices = @transform_1, window_bounds = array<i64: 1, 104, 64>}, {pipeline_mode = #tpu.pipeline_mode<synchronous>, transform_indices = @transform_2, window_bounds = array<i64: 8, 2>}]} {
    %c0 = arith.constant 0 : index
    %c0_0 = arith.constant 0 : index
    %c0_1 = arith.constant 0 : index
    %0 = vector.load %arg3[%c0, %c0_0, %c0_1] : memref<1x104x64xf32, #tpu.memory_space<vmem>>, vector<1x32x64xf32>
    %1 = vector.shape_cast %0 : vector<1x32x64xf32> to vector<32x64xf32>
    %c0_2 = arith.constant 0 : index
    %c96 = arith.constant 96 : index
    %c0_3 = arith.constant 0 : index
    %2 = vector.load %arg3[%c0_2, %c96, %c0_3] : memref<1x104x64xf32, #tpu.memory_space<vmem>>, vector<1x1x64xf32>
    %3 = vector.shape_cast %2 : vector<1x1x64xf32> to vector<1x64xf32>
    %c0_4 = arith.constant 0 : index
    %c0_5 = arith.constant 0 : index
    %4 = vector.load %arg2[%c0_4, %c0_5] : memref<8x32xf32, #tpu.memory_space<vmem>>, vector<8x32xf32>
    %cst = arith.constant dense<0.000000e+00> : vector<8x64xf32>
    %5 = tpu.matmul %4, %1, %cst {dimension_numbers = #tpu.dot_dimension_numbers<[1], [0], [0], [1], [0, 0, 1, 1], [], []>} : vector<8x32xf32>, vector<32x64xf32>, vector<8x64xf32> -> vector<8x64xf32>
    %6 = vector.broadcast %3 : vector<1x64xf32> to vector<8x64xf32>
    %7 = arith.addf %5, %6 : vector<8x64xf32>
    %cst_6 = arith.constant 0.000000e+00 : f32
    %8 = vector.broadcast %cst_6 : f32 to vector<8x64xf32>
    %9 = arith.maximumf %7, %8 : vector<8x64xf32>
    %c0_7 = arith.constant 0 : index
    %c32 = arith.constant 32 : index
    %c0_8 = arith.constant 0 : index
    %10 = vector.load %arg3[%c0_7, %c32, %c0_8] : memref<1x104x64xf32, #tpu.memory_space<vmem>>, vector<1x64x64xf32>
    %11 = vector.shape_cast %10 : vector<1x64x64xf32> to vector<64x64xf32>
    %c0_9 = arith.constant 0 : index
    %c97 = arith.constant 97 : index
    %c0_10 = arith.constant 0 : index
    %12 = vector.load %arg3[%c0_9, %c97, %c0_10] : memref<1x104x64xf32, #tpu.memory_space<vmem>>, vector<1x1x64xf32>
    %13 = vector.shape_cast %12 : vector<1x1x64xf32> to vector<1x64xf32>
    %cst_11 = arith.constant dense<0.000000e+00> : vector<8x64xf32>
    %14 = tpu.matmul %9, %11, %cst_11 {dimension_numbers = #tpu.dot_dimension_numbers<[1], [0], [0], [1], [0, 0, 1, 1], [], []>} : vector<8x64xf32>, vector<64x64xf32>, vector<8x64xf32> -> vector<8x64xf32>
    %15 = vector.broadcast %13 : vector<1x64xf32> to vector<8x64xf32>
    %16 = arith.addf %14, %15 : vector<8x64xf32>
    %cst_12 = arith.constant 0.000000e+00 : f32
    %17 = vector.broadcast %cst_12 : f32 to vector<8x64xf32>
    %18 = arith.maximumf %16, %17 : vector<8x64xf32>
    %c0_13 = arith.constant 0 : index
    %c98 = arith.constant 98 : index
    %c0_14 = arith.constant 0 : index
    %19 = vector.load %arg3[%c0_13, %c98, %c0_14] : memref<1x104x64xf32, #tpu.memory_space<vmem>>, vector<1x2x64xf32>
    %20 = vector.shape_cast %19 : vector<1x2x64xf32> to vector<2x64xf32>
    %c0_15 = arith.constant 0 : index
    %c100 = arith.constant 100 : index
    %c0_16 = arith.constant 0 : index
    %21 = vector.load %arg3[%c0_15, %c100, %c0_16] : memref<1x104x64xf32, #tpu.memory_space<vmem>>, vector<1x1x2xf32>
    %22 = vector.shape_cast %21 : vector<1x1x2xf32> to vector<1x2xf32>
    %cst_17 = arith.constant dense<0.000000e+00> : vector<8x2xf32>
    %23 = tpu.matmul %18, %20, %cst_17 {dimension_numbers = #tpu.dot_dimension_numbers<[1], [1], [0], [0], [0, 0, 1, 0], [], []>} : vector<8x64xf32>, vector<2x64xf32>, vector<8x2xf32> -> vector<8x2xf32>
    %24 = vector.broadcast %22 : vector<1x2xf32> to vector<8x2xf32>
    %25 = arith.addf %23, %24 : vector<8x2xf32>
    %c0_18 = arith.constant 0 : index
    %c0_19 = arith.constant 0 : index
    %26 = vector.load %arg4[%c0_18, %c0_19] : memref<8x2xf32, #tpu.memory_space<vmem>>, vector<8x2xf32>
    tpu.vector_store %arg4[%c0_18, %c0_19], %25 {strides = array<i32>} : memref<8x2xf32, #tpu.memory_space<vmem>>, vector<8x2xf32>,
    return
  }
  func.func @transform_0(%arg0: i32, %arg1: memref<1xi32, #tpu.memory_space<smem>>) -> (i32, i32) {
    %c0_i32 = arith.constant 0 : i32
    %c0_i32_0 = arith.constant 0 : i32
    %c0_i32_1 = arith.constant 0 : i32
    return %c0_i32, %c0_i32_0 : i32, i32
  }
  func.func @transform_1(%arg0: i32, %arg1: memref<1xi32, #tpu.memory_space<smem>>) -> (i32, i32, i32) {
    %c0 = arith.constant 0 : index
    %0 = memref.load %arg1[%c0] : memref<1xi32, #tpu.memory_space<smem>>
    %c0_i32 = arith.constant 0 : i32
    %c0_i32_0 = arith.constant 0 : i32
    %c0_i32_1 = arith.constant 0 : i32
    return %0, %c0_i32, %c0_i32_0 : i32, i32, i32
  }
  func.func @transform_2(%arg0: i32, %arg1: memref<1xi32, #tpu.memory_space<smem>>) -> (i32, i32) {
    %c0_i32 = arith.constant 0 : i32
    %c0_i32_0 = arith.constant 0 : i32
    %c0_i32_1 = arith.constant 0 : i32
    return %c0_i32, %c0_i32_0 : i32, i32
  }
}

</mosaic_0001>

<bundles_post_ra>
// kernel: op_critic_twin_forward.1
= control target key start
LH: loop header
LB: loop body
LE: loop exit
PB: predicated region body
PF: predicated region fallthrough
CT: control target
= control target key end

     0   :  { %v381_v0 = vmov 0.0|0.0   ;;  %vm382_vm0 = vmmov 0   ;;  %v383_v1 = vmov 0.0   ;;  %vm43_vm1 = vcmask 261120   ;;  %s440_s0 = inlined_call_operand.<no memory space> [shape: s32[1], index: 0, kind: input, shape index: {}]   ;;  %s441_s2 = inlined_call_operand.vmem [shape: f32[3,104,64], index: 2, kind: input, shape index: {}]   ;;  %s442_s1 = inlined_call_operand.vmem [shape: f32[8,32], index: 1, kind: input, shape index: {}]   ;;  %s443_s3 = inlined_call_operand.vmem [shape: f32[8,2], index: 3, kind: output, shape index: {}]  }
   0x1   :  { %359 = vmatprep.subr.bf16.mxu0 %v381_v0  ;;  %p27_p0 = scmp.lt.s32.totalorder %s440_s0, 2  ;;  %332 = vmatprep.mubr.msk.f32.mxu0 %vm382_vm0, %v383_v1  ;;  %v38_v16 = vld [vmem:[%s442_s1] sm:$0xff]  ;;  %vm131_vm2 = vcmask 523264   ;;  %vm288_vm3 = vcmask 15360  }
   0x2   :  { %365 = vmatprep.subr.bf16.mxu1 %v381_v0  ;;  %351 = vmatprep.mubr.msk.f32.mxu1 %vm382_vm0, %v383_v1 }
   0x3   :  { %s445_s0 = smov (!%p27_p0, %s440_s0), 2 }
   0x4   :  { %s377_s16 = smul.u32 104, %s445_s0 }
   0x6   :  { %s415_s19 = scalar_lea.vmem %s441_s2, %s377_s16 }
   0x7   :  { %v33_v2 = vld [vmem:[%s415_s19] sm:$0xff]  ;;  %v34_v3 = vld [vmem:[%s415_s19 + $0x8] sm:$0xff]  ;;  %v35_v4 = vld [vmem:[%s415_s19 + $0x10] sm:$0xff] }
   0x8   :  { %v360_v5 = vpack.c.bf16 %v34_v3, %v33_v2  ;;  %v36_v6 = vld [vmem:[%s415_s19 + $0x18] sm:$0xff]  ;;  %v118_v7 = vld [vmem:[%s415_s19 + $0x20] sm:$0xff]  ;;  %v119_v8 = vld [vmem:[%s415_s19 + $0x28] sm:$0xff] }
   0x9   :  { %v366_v9 = vpack.c.bf16 %v119_v8, %v118_v7  ;;  %v120_v10 = vld [vmem:[%s415_s19 + $0x30] sm:$0xff]  ;;  %v121_v11 = vld [vmem:[%s415_s19 + $0x38] sm:$0xff]  ;;  %v363_v12 = vpack.c.bf16 %v36_v6, %v35_v4  ;;  %v122_v14 = vld [vmem:[%s415_s19 + $0x40] sm:$0xff] }
   0xa   :  { %361 = vmatpush3.bf16.msra.mxu0 %v360_v5  ;;  %v369_v13 = vpack.c.bf16 %v121_v11, %v120_v10  ;;  %v123_v15 = vld [vmem:[%s415_s19 + $0x48] sm:$0xff]  ;;  %v124_v18 = vld [vmem:[%s415_s19 + $0x50] sm:$0xff]  ;;  %v125_v19 = vld [vmem:[%s415_s19 + $0x58] sm:$0xff] }
   0xb   :  { %362 = vmatprep.subr.bf16.mxu0 %v381_v0  ;;  %367 = vmatpush3.bf16.msra.mxu1 %v366_v9  ;;  %v372_v17 = vpack.c.bf16 %v123_v15, %v122_v14  ;;  %v375_v20 = vpack.c.bf16 %v125_v19, %v124_v18  ;;  %v301_v21 = vld [vmem:[%s415_s19 + $0x60] ss:$0 sm:$0xff]  ;;  %v206_v26 = vld [vmem:[%s415_s19 + $0x62] sm:$0x3]  ;;  %v303_v27 = vld [vmem:[%s415_s19 + $0x61] ss:$0 sm:$0xff] }
   0xc   :  { %368 = vmatprep.subr.bf16.mxu1 %v381_v0  ;;  %v305_v32 = vld [vmem:[%s415_s19 + $0x64] ss:$0 sm:$0xff] }
   0xe   :  { %364 = vmatpush3.bf16.msra.mxu0 %v363_v12 }
   0xf   :  { %370 = vmatpush3.bf16.msra.mxu1 %v369_v13  ;;  %354 = vmatprep.subr.mxu0 %v383_v1 }
  0x10   :  { %371 = vmatprep.subr.bf16.mxu1 %v381_v0 }
  0x11   :  { %333 = vmatmul.mubr.msk.f32.vlgmr.msra.gmra.mrb[0].mxu0 %vm43_vm1, %v38_v16 }
  0x12   :  { %356 = vmatprep.mubr.msk.f32.mxu0 %vm382_vm0, %v383_v1 }
  0x13   :  { %373 = vmatpush3.bf16.msra.mxu1 %v372_v17 }
  0x14   :  { %374 = vmatprep.subr.bf16.mxu1 %v381_v0 }
  0x17   :  { %376 = vmatpush3.bf16.msra.mxu1 %v375_v20  ;;  %355 = vmatpush3.xpose.msk.msra.mxu0 %vm131_vm2, %v206_v26 }
  0xe4   :  { %v113_v22 = vpop.f32.mrb[0].mxu0 }
  0xe5   :  { %v114_v23 = vadd.f32 %v301_v21, %v113_v22  ;;  %v334_v24 = vpop.f32.mrb[1].mxu0 }
  0xe7   :  { %v117_v25 = vmax.f32 %v114_v23, 0.0 }
  0xe9   :  { %352 = vmatmul.mubr.msk.f32.vlgmr.msra.gmra.mrb[0].mxu1 %vm131_vm2, %v117_v25 }
 0x1bc   :  { %v201_v28 = vpop.f32.mrb[0].mxu1 }
 0x1bd   :  { %v202_v29 = vadd.f32 %v303_v27, %v201_v28  ;;  %v353_v30 = vpop.f32.mrb[1].mxu1 }
 0x1bf   :  { %v205_v31 = vmax.f32 %v202_v29, 0.0 }
 0x1c1   :  { %357 = vmatmul.mubr.msk.f32.vlgmr.msra.gmra.mrb[2].mxu0 %vm131_vm2, %v205_v31 }
 0x294   :  { %v284_v33 = vpop.f32.mrb[2].mxu0 }
 0x295   :  { %v285_v34 = vadd.f32 %v305_v32, %v284_v33  ;;  %v358_v35 = vpop.f32.mrb[3].mxu0 }
 0x297   :  { %289 = vst.msk [vmem:[%s443_s3] sm:$0xff] %vm288_vm3, %v285_v34 }

</bundles_post_ra>
